<compile_context>
chip_gen: v5e
topology: v5e:2x2
jax: 0.10.0
libtpu: 0.0.40
codegen_flags: <defaults>
</compile_context>

<pallas_src>
import functools
import math

import jax
import jax.numpy as jnp
from jax import lax
from jax.experimental import pallas as pl
from jax.experimental.pallas import tpu as pltpu

SMOOTH = 1.0
LANES = 128
SUBLANES = 8
NCORES = 2            # leading "parallel" axis; helps v7x, ~free on 1-TC chips
BLK_R_CAP = 8192      # 8192 rows * 128 lanes * 4 B = 4 MiB per input block
LN2 = math.log(2.0)


def _round_up(x, m):
    return (x + m - 1) // m * m


def _bce_dice_kernel(p_ref, l_ref, out_ref, *, npc, nblk, ncores, tail_valid_rows):
    """Accumulate per-lane partial sums of (bce, x*y, x+y) over row blocks.

    Grid: (ncores ["parallel"], npc ["arbitrary"]).  Global block index
    g = c*npc + i; the wrapper clamps g to nblk-1 in the index_map, so trailing
    grid slots on the last core may re-read the final block — they are skipped
    here.  tail_valid_rows is the number of in-bounds rows of block nblk-1
    (== blk_r when the last block is full, in which case no mask code is emitted).
    """
    c = pl.program_id(0)
    i = pl.program_id(1)
    g = c * npc + i

    @pl.when(i == 0)
    def _():
        out_ref[...] = jnp.zeros_like(out_ref)

    x = p_ref[...].astype(jnp.float32)
    y = l_ref[...].astype(jnp.float32)
    blk_r = x.shape[0]

    # Numerically-stable BCE with logits (matches torch.nn.BCEWithLogitsLoss):
    #   loss = max(x, 0) - x*y + log1p(exp(-|x|));  mean reduction in the wrapper.
    bce = jnp.maximum(x, 0.0) - x * y + jnp.log1p(jnp.exp(-jnp.abs(x)))
    xy = x * y
    xpy = x + y

    def _accumulate(b, u, v):
        # (blk_r,128) -> (blk_r/8, 8, 128) does not cross (8,128) tiles: free.
        out_ref[0] = out_ref[0] + jnp.sum(b.reshape(-1, SUBLANES, LANES), axis=0)
        out_ref[1] = out_ref[1] + jnp.sum(u.reshape(-1, SUBLANES, LANES), axis=0)
        out_ref[2] = out_ref[2] + jnp.sum(v.reshape(-1, SUBLANES, LANES), axis=0)

    has_tail = tail_valid_rows != blk_r      # last block partially out of bounds
    has_overflow = ncores * npc != nblk      # duplicated (clamped) trailing blocks

    if not has_tail and not has_overflow:
        # Common path: every block is fully in-bounds -> no masking at all.
        _accumulate(bce, xy, xpy)
    else:
        full_limit = nblk - 1 if has_tail else nblk
        if full_limit > 0:
            @pl.when(g < full_limit)
            def _():
                _accumulate(bce, xy, xpy)

        if has_tail:
            @pl.when(g == nblk - 1)
            def _():
                rows_iota = lax.broadcasted_iota(jnp.int32, (blk_r, LANES), 0)
                valid = rows_iota < tail_valid_rows
                _accumulate(
                    jnp.where(valid, bce, 0.0),
                    jnp.where(valid, xy, 0.0),
                    jnp.where(valid, xpy, 0.0),
                )
        # g >= nblk (overflow duplicates) fall through: no accumulation.


@functools.partial(jax.jit, static_argnames="blk_r_cap")
def bce_dice_loss(preds, labels, blk_r_cap=BLK_R_CAP):
    """preds, labels: identical shape (e.g. NCHW), any float/int dtype.

    Returns the scalar f32 loss  (1 - dice_on_raw_logits) + BCEWithLogits(mean).
    Inputs are NOT upcast in the wrapper; cast to f32 happens in-register, so
    bf16/int8 labels (and bf16 preds) reduce HBM traffic proportionally.
    """
    assert preds.shape == labels.shape
    total = math.prod(preds.shape)
    assert total > 0

    rows = pl.cdiv(total, LANES)           # static python int
    lane_pad = rows * LANES - total        # zeros appended when total % 128 != 0

    blk_r = min(blk_r_cap, _round_up(rows, SUBLANES))
    nblk = pl.cdiv(rows, blk_r)
    ncores = NCORES if nblk >= 2 else 1
    npc = pl.cdiv(nblk, ncores)
    tail_valid_rows = rows - (nblk - 1) * blk_r   # rows of data in the last block

    def _prep(a):
        flat = a.reshape(-1)               # contiguous reshape: free
        if lane_pad:
            # Only ragged inputs pay this copy.  Padded zeros contribute exactly
            # ln(2) each to the BCE sum (corrected below) and 0 to the dice sums.
            flat = jnp.pad(flat, (0, lane_pad))
        return flat.reshape(rows, LANES)

    p2 = _prep(preds)
    l2 = _prep(labels)

    kernel = functools.partial(
        _bce_dice_kernel,
        npc=npc,
        nblk=nblk,
        ncores=ncores,
        tail_valid_rows=tail_valid_rows,
    )

    if ncores * npc == nblk:
        in_map = lambda c, i: (c * npc + i, 0)
    else:
        # Odd block count on the 2-core split: clamp so the index stays in range;
        # the duplicated trailing block is skipped inside the kernel.
        in_map = lambda c, i: (jnp.minimum(c * npc + i, nblk - 1), 0)

    partials = pl.pallas_call(
        kernel,
        out_shape=jax.ShapeDtypeStruct((ncores * 3, SUBLANES, LANES), jnp.float32),
        grid=(ncores, npc),
        in_specs=[
            pl.BlockSpec((blk_r, LANES), in_map),
            pl.BlockSpec((blk_r, LANES), in_map),
        ],
        out_specs=pl.BlockSpec((3, SUBLANES, LANES), lambda c, i: (c, 0, 0)),
        compiler_params=pltpu.CompilerParams(
            dimension_semantics=("parallel", "arbitrary"),
            # 2 inputs x 2 buffers x 4 MiB = 16 MiB at blk_r=8192: above v5e's
            # 16 MiB default scoped limit, well under v7x's 64 MiB physical VMEM.
            vmem_limit_bytes=32 * 1024 * 1024,
        ),
    )(p2, l2)

    # Final (tiny) cross-lane/sublane reduction + scalar combine, done once.
    sums = partials.reshape(ncores, 3, SUBLANES, LANES).sum(axis=(0, 2, 3))
    bce_sum = sums[0]
    if lane_pad:
        bce_sum = bce_sum - jnp.float32(lane_pad * LN2)
    xy_sum, xpy_sum = sums[1], sums[2]

    score_bce = bce_sum / jnp.float32(total)
    # Dice on raw preds (exactly as the PyTorch module: no sigmoid applied).
    score = (2.0 * xy_sum + SMOOTH) / (xpy_sum + SMOOTH)
    score_dice = 1.0 - score
    return score_dice + score_bce


def _reference(preds, labels):
    x = preds.astype(jnp.float32)
    y = labels.astype(jnp.float32)
    bce = jnp.mean(jnp.maximum(x, 0.0) - x * y + jnp.log1p(jnp.exp(-jnp.abs(x))))
    xf = x.reshape(-1)
    yf = y.reshape(-1)
    inter = jnp.sum(xf * yf)
    score = (2.0 * inter + SMOOTH) / (jnp.sum(xf) + jnp.sum(yf) + SMOOTH)
    return (1.0 - score) + bce


def _check(preds, labels, **kw):
    loss = bce_dice_loss(preds, labels, **kw)
    jax.block_until_ready(loss)
    ref = _reference(preds, labels)
    assert jnp.allclose(loss, ref, rtol=1e-5, atol=1e-5), (loss, ref, kw)


if __name__ == "__main__":
    key = jax.random.PRNGKey(0)
    k1, k2, k3, k4, k5, k6, k7, k8 = jax.random.split(key, 8)

    # 1) Divisible case, single block, bf16 labels (reduced-bytes path).
    shape = (2, 4, 16, 16)  # 2048 elements
    preds = jax.random.normal(k1, shape, dtype=jnp.float32)
    labels = (jax.random.uniform(k2, shape) > 0.5).astype(jnp.bfloat16)
    _check(preds, labels)

    # 2) Ragged shape: lane pad (+ln2 correction) + partial tail block mask.
    shape2 = (2, 3, 15, 17)  # 1530 elements (not a multiple of 128)
    preds2 = jax.random.normal(k3, shape2, dtype=jnp.float32)
    labels2 = (jax.random.uniform(k4, shape2) > 0.5).astype(jnp.float32)
    _check(preds2, labels2)

    # 3) Multi-block / 2-core split, even block count (tiny cap to exercise path).
    _check(preds, labels.astype(jnp.float32), blk_r_cap=8)

    # 4) Multi-block with a partial tail block (rows=15, blk_r=8).
    shape3 = (4, 3, 10, 16)  # 1920 elements = 15 rows of 128
    preds3 = jax.random.normal(k5, shape3, dtype=jnp.float32)
    labels3 = (jax.random.uniform(k6, shape3) > 0.5).astype(jnp.float32)
    _check(preds3, labels3, blk_r_cap=8)

    # 5) Odd block count on the 2-core split (exercises clamp + skip) + tail mask.
    shape4 = (5, 4, 8, 16)  # 2560 elements = 20 rows, 3 blocks of 8
    preds4 = jax.random.normal(k7, shape4, dtype=jnp.float32)
    labels4 = (jax.random.uniform(k8, shape4) > 0.5).astype(jnp.float32)
    _check(preds4, labels4, blk_r_cap=8)

    print("KERNEL_OK")
</pallas_src>

<mosaic_0001>
module attributes {stable_mosaic.version = 11 : i64} {
  func.func @_bce_dice_kernel(%arg0: i32, %arg1: i32, %arg2: memref<16x128xf32, #tpu.memory_space<vmem>>, %arg3: memref<16x128xbf16, #tpu.memory_space<vmem>>, %arg4: memref<3x8x128xf32, #tpu.memory_space<vmem>>) attributes {dimension_semantics = [#tpu.dimension_semantics<parallel>, #tpu.dimension_semantics<arbitrary>], iteration_bounds = array<i64: 1, 1>, scalar_prefetch = 0 : i64, scratch_operands = 0 : i64, tpu.core_type = #tpu.core_type<tc>, window_params = [{transform_indices = @transform_0, window_bounds = array<i64: 16, 128>}, {transform_indices = @transform_1, window_bounds = array<i64: 16, 128>}, {transform_indices = @transform_2, window_bounds = array<i64: 3, 8, 128>}]} {
    %c0_i32 = arith.constant 0 : i32
    %0 = arith.cmpi eq, %arg1, %c0_i32 : i32
    %1 = arith.extui %0 : i1 to i32
    %c0_i32_0 = arith.constant 0 : i32
    %2 = arith.cmpi ne, %1, %c0_i32_0 : i32
    scf.if %2 {
      %cst_24 = arith.constant 0.000000e+00 : f32
      %42 = vector.broadcast %cst_24 : f32 to vector<3x8x128xf32>
      %c0_25 = arith.constant 0 : index
      %c0_26 = arith.constant 0 : index
      %c0_27 = arith.constant 0 : index
      %43 = vector.load %arg4[%c0_25, %c0_26, %c0_27] : memref<3x8x128xf32, #tpu.memory_space<vmem>>, vector<3x8x128xf32>
      tpu.vector_store %arg4[%c0_25, %c0_26, %c0_27], %42 {strides = array<i32>} : memref<3x8x128xf32, #tpu.memory_space<vmem>>, vector<3x8x128xf32>,
    } else {
    }
    %c0 = arith.constant 0 : index
    %c0_1 = arith.constant 0 : index
    %3 = vector.load %arg2[%c0, %c0_1] : memref<16x128xf32, #tpu.memory_space<vmem>>, vector<16x128xf32>
    %c0_2 = arith.constant 0 : index
    %c0_3 = arith.constant 0 : index
    %4 = vector.load %arg3[%c0_2, %c0_3] : memref<16x128xbf16, #tpu.memory_space<vmem>>, vector<16x128xbf16>
    %5 = arith.extf %4 : vector<16x128xbf16> to vector<16x128xf32>
    %cst = arith.constant 0.000000e+00 : f32
    %6 = vector.broadcast %cst : f32 to vector<16x128xf32>
    %7 = arith.maximumf %3, %6 : vector<16x128xf32>
    %8 = arith.mulf %3, %5 : vector<16x128xf32>
    %9 = arith.subf %7, %8 : vector<16x128xf32>
    %10 = math.absf %3 : vector<16x128xf32>
    %cst_4 = arith.constant 0.000000e+00 : f32
    %11 = vector.broadcast %cst_4 : f32 to vector<16x128xf32>
    %12 = arith.subf %11, %10 : vector<16x128xf32>
    %13 = math.exp %12 : vector<16x128xf32>
    %14 = math.log1p %13 : vector<16x128xf32>
    %15 = arith.addf %9, %14 : vector<16x128xf32>
    %16 = arith.mulf %3, %5 : vector<16x128xf32>
    %17 = arith.addf %3, %5 : vector<16x128xf32>
    %c0_5 = arith.constant 0 : index
    %c0_6 = arith.constant 0 : index
    %c0_7 = arith.constant 0 : index
    %18 = vector.load %arg4[%c0_5, %c0_6, %c0_7] : memref<3x8x128xf32, #tpu.memory_space<vmem>>, vector<1x8x128xf32>
    %19 = vector.shape_cast %18 : vector<1x8x128xf32> to vector<8x128xf32>
    %20 = vector.shape_cast %15 : vector<16x128xf32> to vector<2x8x128xf32>
    %cst_8 = arith.constant dense<0.000000e+00> : vector<8x128xf32>
    %21 = vector.multi_reduction <add>, %20, %cst_8 [0] : vector<2x8x128xf32> to vector<8x128xf32>
    %22 = arith.addf %19, %21 : vector<8x128xf32>
    %c0_9 = arith.constant 0 : index
    %c0_10 = arith.constant 0 : index
    %c0_11 = arith.constant 0 : index
    %23 = vector.load %arg4[%c0_9, %c0_10, %c0_11] : memref<3x8x128xf32, #tpu.memory_space<vmem>>, vector<1x8x128xf32>
    %24 = vector.shape_cast %23 : vector<1x8x128xf32> to vector<8x128xf32>
    %25 = vector.shape_cast %22 : vector<8x128xf32> to vector<1x8x128xf32>
    tpu.vector_store %arg4[%c0_9, %c0_10, %c0_11], %25 {strides = array<i32>} : memref<3x8x128xf32, #tpu.memory_space<vmem>>, vector<1x8x128xf32>,
    %c1 = arith.constant 1 : index
    %c0_12 = arith.constant 0 : index
    %c0_13 = arith.constant 0 : index
    %26 = vector.load %arg4[%c1, %c0_12, %c0_13] : memref<3x8x128xf32, #tpu.memory_space<vmem>>, vector<1x8x128xf32>
    %27 = vector.shape_cast %26 : vector<1x8x128xf32> to vector<8x128xf32>
    %28 = vector.shape_cast %16 : vector<16x128xf32> to vector<2x8x128xf32>
    %cst_14 = arith.constant dense<0.000000e+00> : vector<8x128xf32>
    %29 = vector.multi_reduction <add>, %28, %cst_14 [0] : vector<2x8x128xf32> to vector<8x128xf32>
    %30 = arith.addf %27, %29 : vector<8x128xf32>
    %c1_15 = arith.constant 1 : index
    %c0_16 = arith.constant 0 : index
    %c0_17 = arith.constant 0 : index
    %31 = vector.load %arg4[%c1_15, %c0_16, %c0_17] : memref<3x8x128xf32, #tpu.memory_space<vmem>>, vector<1x8x128xf32>
    %32 = vector.shape_cast %31 : vector<1x8x128xf32> to vector<8x128xf32>
    %33 = vector.shape_cast %30 : vector<8x128xf32> to vector<1x8x128xf32>
    tpu.vector_store %arg4[%c1_15, %c0_16, %c0_17], %33 {strides = array<i32>} : memref<3x8x128xf32, #tpu.memory_space<vmem>>, vector<1x8x128xf32>,
    %c2 = arith.constant 2 : index
    %c0_18 = arith.constant 0 : index
    %c0_19 = arith.constant 0 : index
    %34 = vector.load %arg4[%c2, %c0_18, %c0_19] : memref<3x8x128xf32, #tpu.memory_space<vmem>>, vector<1x8x128xf32>
    %35 = vector.shape_cast %34 : vector<1x8x128xf32> to vector<8x128xf32>
    %36 = vector.shape_cast %17 : vector<16x128xf32> to vector<2x8x128xf32>
    %cst_20 = arith.constant dense<0.000000e+00> : vector<8x128xf32>
    %37 = vector.multi_reduction <add>, %36, %cst_20 [0] : vector<2x8x128xf32> to vector<8x128xf32>
    %38 = arith.addf %35, %37 : vector<8x128xf32>
    %c2_21 = arith.constant 2 : index
    %c0_22 = arith.constant 0 : index
    %c0_23 = arith.constant 0 : index
    %39 = vector.load %arg4[%c2_21, %c0_22, %c0_23] : memref<3x8x128xf32, #tpu.memory_space<vmem>>, vector<1x8x128xf32>
    %40 = vector.shape_cast %39 : vector<1x8x128xf32> to vector<8x128xf32>
    %41 = vector.shape_cast %38 : vector<8x128xf32> to vector<1x8x128xf32>
    tpu.vector_store %arg4[%c2_21, %c0_22, %c0_23], %41 {strides = array<i32>} : memref<3x8x128xf32, #tpu.memory_space<vmem>>, vector<1x8x128xf32>,
    return
  }
  func.func @transform_0(%arg0: i32, %arg1: i32) -> (i32, i32) {
    %c1_i32 = arith.constant 1 : i32
    %0 = arith.muli %arg0, %c1_i32 : i32
    %1 = arith.addi %0, %arg1 : i32
    %c0_i32 = arith.constant 0 : i32
    %c0_i32_0 = arith.constant 0 : i32
    return %1, %c0_i32 : i32, i32
  }
  func.func @transform_1(%arg0: i32, %arg1: i32) -> (i32, i32) {
    %c1_i32 = arith.constant 1 : i32
    %0 = arith.muli %arg0, %c1_i32 : i32
    %1 = arith.addi %0, %arg1 : i32
    %c0_i32 = arith.constant 0 : i32
    %c0_i32_0 = arith.constant 0 : i32
    return %1, %c0_i32 : i32, i32
  }
  func.func @transform_2(%arg0: i32, %arg1: i32) -> (i32, i32, i32) {
    %c0_i32 = arith.constant 0 : i32
    %c0_i32_0 = arith.constant 0 : i32
    %c0_i32_1 = arith.constant 0 : i32
    return %arg0, %c0_i32, %c0_i32_0 : i32, i32, i32
  }
}

</mosaic_0001>

<bundles_post_ra>
// kernel: bce_dice_loss.1
= control target key start
LH: loop header
LB: loop body
LE: loop exit
PB: predicated region body
PF: predicated region fallthrough
CT: control target
= control target key end

     0   :  { %s184_s0 = inlined_call_operand.vmem [shape: f32[16,128], index: 0, kind: input, shape index: {}]   ;;  %s185_s1 = inlined_call_operand.vmem [shape: bf16[16,128], index: 1, kind: input, shape index: {}]   ;;  %s186_s2 = inlined_call_operand.vmem [shape: f32[3,8,128], index: 2, kind: output, shape index: {}]  }
   0x1   :  { %v62_v0 = vld [vmem:[%s184_s0] sm:$0xff]  ;;  %v63_v1 = vld [vmem:[%s184_s0 + $0x8] sm:$0xff] }
   0x2   :  { %v139_v2 = vld [vmem:[%s185_s1] sm:$0xff]   ;;  %v74_v5 = vand.u32 2147483647, %v62_v0  ;;  %v75_v6 = vand.u32 2147483647, %v63_v1  ;;  %v68_v24 = vmax.f32 %v62_v0, 0.0 }
   0x3   :  { %v140_v3 = vunpack.c.l.bf16 %v139_v2  ;;  %v141_v4 = vunpack.c.h.bf16 %v139_v2  ;;  %v69_v27 = vmax.f32 %v63_v1, 0.0 }
   0x4   :  { %v76_v11 = vsub.f32 0.0, %v74_v5  ;;  %v77_v12 = vsub.f32 0.0, %v75_v6 }
   0x5   :  { %v70_v7 = vmul.f32 %v140_v3, %v62_v0  ;;  %v71_v8 = vmul.f32 %v141_v4, %v63_v1  ;;  %v102_v9 = vadd.f32 %v140_v3, %v62_v0  ;;  %v103_v10 = vadd.f32 %v141_v4, %v63_v1 }
   0x6   :  { %v78_v15 = vmul.f32 1.442695, %v76_v11  ;;  %v80_v16 = vmul.f32 1.442695, %v77_v12 }
   0x7   :  { %v110_v13 = vadd.f32 %v71_v8, %v70_v7  ;;  %v115_v14 = vadd.f32 %v103_v10, %v102_v9  ;;  %v72_v31 = vsub.f32 %v68_v24, %v70_v7  ;;  %v73_v34 = vsub.f32 %v69_v27, %v71_v8 }
   0x8   :  { %143 = vpow2.f32 %v78_v15 }
   0x9   :  { %145 = vpow2.f32 %v80_v16  ;;  %135 = vst [vmem:[%s186_s2 + $0x8] sm:$0xff] %v110_v13 }
   0xa   :  { %137 = vst [vmem:[%s186_s2 + $0x10] sm:$0xff] %v115_v14 }
   0xe   :  { %v144_v17 = vpop.eup %143 }
   0xf   :  { %v146_v18 = vpop.eup %145  ;;  %v82_v19 = vadd.f32 1.0, %v144_v17  ;;  %v85_v20 = vmul.f32 -0.5, %v144_v17  ;;  %v88_v25 = vand.u32 2147483647, %v144_v17 }
  0x10   :  { %v91_v21 = vadd.f32 1.0, %v146_v18  ;;  %v94_v22 = vmul.f32 -0.5, %v146_v18  ;;  %v97_v28 = vand.u32 2147483647, %v146_v18 }
  0x11   :  { %147 = vlog2.f32 %v82_v19  ;;  %v86_v23 = vadd.f32 1.0, %v85_v20  ;;  %vm89_vm0 = vcmp.lt.f32.partialorder %v88_v25, 0.0004427343 }
  0x12   :  { %149 = vlog2.f32 %v91_v21  ;;  %v95_v26 = vadd.f32 1.0, %v94_v22  ;;  %vm98_vm1 = vcmp.lt.f32.partialorder %v97_v28, 0.0004427343 }
  0x13   :  { %v87_v29 = vmul.f32 %v144_v17, %v86_v23 }
  0x14   :  { %v96_v32 = vmul.f32 %v146_v18, %v95_v26 }
  0x17   :  { %v148_v30 = vpop.eup %147 }
  0x18   :  { %v150_v33 = vpop.eup %149  ;;  %v84_v35 = vmul.f32 0.6931472, %v148_v30 }
  0x19   :  { %v93_v36 = vmul.f32 0.6931472, %v150_v33 }
  0x1a   :  { %v90_v37 = vsel %vm89_vm0, %v87_v29, %v84_v35 }
  0x1b   :  { %v99_v38 = vsel %vm98_vm1, %v96_v32, %v93_v36  ;;  %v100_v39 = vadd.f32 %v90_v37, %v72_v31 }
  0x1c   :  { %v101_v40 = vadd.f32 %v99_v38, %v73_v34 }
  0x1e   :  { %v105_v41 = vadd.f32 %v101_v40, %v100_v39 }
  0x20   :  { %107 = vst [vmem:[%s186_s2] sm:$0xff] %v105_v41 }

</bundles_post_ra>
